<compile_context>
chip_gen: v7x
topology: tpu7x:2x2x1
jax: 0.10.0
libtpu: 0.0.40
codegen_flags: <defaults>
</compile_context>

<pallas_src>
import math

import jax
import jax.numpy as jnp
from jax.experimental import pallas as pl
from jax.experimental.pallas import tpu as pltpu


def resblock_kernel(x_ref, w1_ref, b1_ref, w2_ref, b2_ref, o_ref):
    # x_ref : (TM, P*D)   tile of packed rows (lane-dense, f32)
    # w1_ref: (P*D, P*H)  block-diagonal W1 (matmul dtype),  b1_ref: (1, P*H) f32
    # w2_ref: (P*H, P*D)  block-diagonal W2 (matmul dtype),  b2_ref: (1, P*D) f32
    x = x_ref[...]
    xm = x.astype(w1_ref.dtype)                       # bf16 (or f32) for the MXU
    h = jnp.dot(xm, w1_ref[...], preferred_element_type=jnp.float32)
    h = jnp.tanh(h + b1_ref[...])                     # bias add + tanh in f32
    # Explicit precision choice: activations rounded to the matmul dtype here.
    y = jnp.dot(h.astype(w2_ref.dtype), w2_ref[...],
                preferred_element_type=jnp.float32)
    # residual_module = Identity -> add the (packed) input back, in f32.
    o_ref[...] = (y + b2_ref[...] + x.astype(jnp.float32)).astype(o_ref.dtype)


def pack_resblock_params(w1, b1, w2, b2, *, matmul_dtype=jnp.bfloat16):
    """Pack the ResBlock parameters once (hoisted out of the per-call path).

    P consecutive rows of x are folded into one packed row of width P*D (pure
    row-major reshape, no data movement); the weights become block-diagonal via
    kron so both contraction/lane dims are multiples of 128 (full-lane MXU work
    and unmasked 128-lane stores).  Mathematically exact (off-diagonal blocks
    are zero).
    """
    D, H = w1.shape
    P = 128 // math.gcd(D, 128)          # smallest P with (P*D) % 128 == 0
    eye = jnp.eye(P, dtype=jnp.float32)
    w1p = jnp.kron(eye, w1.astype(jnp.float32)).astype(matmul_dtype)     # (P*D, P*H)
    w2p = jnp.kron(eye, w2.astype(jnp.float32)).astype(matmul_dtype)     # (P*H, P*D)
    b1p = jnp.tile(jnp.reshape(b1, (1, H)).astype(jnp.float32), (1, P))  # (1, P*H)
    b2p = jnp.tile(jnp.reshape(b2, (1, D)).astype(jnp.float32), (1, P))  # (1, P*D)
    return dict(P=P, D=D, H=H, w1p=w1p, b1p=b1p, w2p=w2p, b2p=b2p)


def _round_up(v, m):
    return ((v + m - 1) // m) * m


_VMEM_BUDGET_BYTES = 20 * 1024 * 1024   # per-step working-set target (portable to v7x)
_VMEM_LIMIT_BYTES = 32 * 1024 * 1024    # scoped VMEM limit handed to Mosaic


def _select_tm(tm, rows, Dp, Hp, io_bytes, w_bytes):
    """Clamp the packed-row tile to the problem size, a VMEM budget, and (for
    2-TensorCore chips) to ~half the rows so the grid has >= 2 parallel steps."""
    # x + out tiles double-buffered (I/O dtype) + f32 intermediate, per row.
    per_row = 2 * 2 * Dp * io_bytes + 4 * Hp
    # Packed weights (conservatively counted double-buffered) + f32 biases.
    fixed = 2 * 2 * Dp * Hp * w_bytes + 2 * 4 * (Hp + Dp)
    # TODO(synk): for very large P*D / P*H (packed weights near the VMEM budget),
    # tile H on a second "arbitrary" grid axis with an accumulator scratch (or
    # fall back to the unpacked layout) instead of shrinking tm to the floor.
    tm_budget = max(8, ((_VMEM_BUDGET_BYTES - fixed) // per_row) // 8 * 8)
    tm = max(8, min(tm, tm_budget, _round_up(rows, 8)))
    if rows >= 16:   # keep >= 2 grid steps so v7x's two TensorCores both work
        tm = min(tm, _round_up(pl.cdiv(rows, 2), 8))
    return max(8, tm)


def resblock_apply(x, params, *, tm=2048):
    """Fused ResBlock forward with pre-packed params.  x: (N, D) -> (N, D)."""
    P, D, H = params["P"], params["D"], params["H"]
    w1p, b1p, w2p, b2p = params["w1p"], params["b1p"], params["w2p"], params["b2p"]
    N, d = x.shape
    assert d == D
    Dp, Hp = P * D, P * H

    # Pad only to a multiple of P (<= P-1 rows); NOT to a whole tile multiple.
    rem = N % P
    if rem:
        x = jnp.pad(x, ((0, P - rem), (0, 0)))
    rows = x.shape[0] // P
    xp = x.reshape(rows, Dp)              # row-major fold, no data movement

    tm = _select_tm(tm, rows, Dp, Hp,
                    io_bytes=x.dtype.itemsize,
                    w_bytes=w1p.dtype.itemsize)
    grid = (pl.cdiv(rows, tm),)           # ragged last block handled by Pallas

    out_p = pl.pallas_call(
        resblock_kernel,
        out_shape=jax.ShapeDtypeStruct((rows, Dp), x.dtype),
        grid_spec=pltpu.PrefetchScalarGridSpec(
            num_scalar_prefetch=0,
            grid=grid,
            in_specs=[
                pl.BlockSpec((tm, Dp), lambda i: (i, 0)),   # packed x tile
                pl.BlockSpec((Dp, Hp), lambda i: (0, 0)),   # W1 (block-diag, resident)
                pl.BlockSpec((1, Hp), lambda i: (0, 0)),    # b1 (tiled, resident)
                pl.BlockSpec((Hp, Dp), lambda i: (0, 0)),   # W2 (block-diag, resident)
                pl.BlockSpec((1, Dp), lambda i: (0, 0)),    # b2 (tiled, resident)
            ],
            out_specs=pl.BlockSpec((tm, Dp), lambda i: (i, 0)),
        ),
        compiler_params=pltpu.CompilerParams(
            dimension_semantics=("parallel",),
            vmem_limit_bytes=_VMEM_LIMIT_BYTES),
    )(xp, w1p, b1p, w2p, b2p)

    out = out_p.reshape(rows * P, D)
    return out[:N] if rem else out


def resblock(x, w1, b1, w2, b2, *, tm=2048, matmul_dtype=jnp.bfloat16):
    """Convenience wrapper (prefer packing once via pack_resblock_params)."""
    return resblock_apply(
        x, pack_resblock_params(w1, b1, w2, b2, matmul_dtype=matmul_dtype), tm=tm)


def resblock_ref(x, w1, b1, w2, b2):
    h = jnp.tanh(x @ w1 + jnp.reshape(b1, (1, -1)))
    return h @ w2 + jnp.reshape(b2, (1, -1)) + x


if __name__ == "__main__":
    # Small shapes consistent with an MLP-style ResBlock.  N=200 is a multiple
    # of the packing factor P=4 (no pad / no output slice); N=203 below
    # exercises the pad-to-P + ragged-last-block path with a multi-step grid.
    N, D, H = 200, 32, 64
    key = jax.random.PRNGKey(0)
    kx, k1, k2, k3, k4 = jax.random.split(key, 5)

    x = jax.random.normal(kx, (N, D), dtype=jnp.float32)
    w1 = jax.random.normal(k1, (D, H), dtype=jnp.float32) * (1.0 / jnp.sqrt(D))
    b1 = jax.random.normal(k2, (1, H), dtype=jnp.float32) * 0.01
    w2 = jax.random.normal(k3, (H, D), dtype=jnp.float32) * (1.0 / jnp.sqrt(H))
    b2 = jax.random.normal(k4, (1, D), dtype=jnp.float32) * 0.01

    ref = resblock_ref(x, w1, b1, w2, b2)

    # Default path: bf16 MXU operands, packed params hoisted, >=2 parallel steps.
    params = pack_resblock_params(w1, b1, w2, b2)
    out = jax.block_until_ready(resblock_apply(x, params))
    assert out.shape == (N, D)
    assert jnp.allclose(out, ref, atol=5e-2, rtol=5e-2), "bf16 path mismatch"

    # Full-precision MXU path must match the reference tightly.
    out_f32 = jax.block_until_ready(
        resblock(x, w1, b1, w2, b2, matmul_dtype=jnp.float32))
    assert jnp.allclose(out_f32, ref, atol=1e-5, rtol=1e-5), "f32 path mismatch"

    # Ragged batch (N not a multiple of P) + tiny tile -> multi-step ragged grid.
    N2 = 203
    x2 = jax.random.normal(kx, (N2, D), dtype=jnp.float32)
    ref2 = resblock_ref(x2, w1, b1, w2, b2)
    out2 = jax.block_until_ready(resblock_apply(x2, params, tm=16))
    assert out2.shape == (N2, D)
    assert jnp.allclose(out2, ref2, atol=5e-2, rtol=5e-2), "ragged path mismatch"

    print("KERNEL_OK")
</pallas_src>

<mosaic_0001>
module attributes {stable_mosaic.version = 11 : i64} {
  func.func @resblock_kernel(%arg0: i32, %arg1: memref<32x128xf32, #tpu.memory_space<vmem>>, %arg2: memref<128x256xbf16, #tpu.memory_space<vmem>>, %arg3: memref<1x256xf32, #tpu.memory_space<vmem>>, %arg4: memref<256x128xbf16, #tpu.memory_space<vmem>>, %arg5: memref<1x128xf32, #tpu.memory_space<vmem>>, %arg6: memref<32x128xf32, #tpu.memory_space<vmem>>) attributes {dimension_semantics = [#tpu.dimension_semantics<parallel>], iteration_bounds = array<i64: 2>, scalar_prefetch = 0 : i64, scratch_operands = 0 : i64, tpu.core_type = #tpu.core_type<tc>, window_params = [{transform_indices = @transform_0, window_bounds = array<i64: 32, 128>}, {pipeline_mode = #tpu.pipeline_mode<synchronous>, transform_indices = @transform_1, window_bounds = array<i64: 128, 256>}, {pipeline_mode = #tpu.pipeline_mode<synchronous>, transform_indices = @transform_2, window_bounds = array<i64: 1, 256>}, {pipeline_mode = #tpu.pipeline_mode<synchronous>, transform_indices = @transform_3, window_bounds = array<i64: 256, 128>}, {pipeline_mode = #tpu.pipeline_mode<synchronous>, transform_indices = @transform_4, window_bounds = array<i64: 1, 128>}, {transform_indices = @transform_5, window_bounds = array<i64: 32, 128>}]} {
    %c0 = arith.constant 0 : index
    %c0_0 = arith.constant 0 : index
    %0 = vector.load %arg1[%c0, %c0_0] : memref<32x128xf32, #tpu.memory_space<vmem>>, vector<32x128xf32>
    %1 = arith.truncf %0 : vector<32x128xf32> to vector<32x128xbf16>
    %c0_1 = arith.constant 0 : index
    %c0_2 = arith.constant 0 : index
    %2 = vector.load %arg2[%c0_1, %c0_2] : memref<128x256xbf16, #tpu.memory_space<vmem>>, vector<128x256xbf16>
    %cst = arith.constant dense<0.000000e+00> : vector<32x256xf32>
    %3 = tpu.matmul %1, %2, %cst {dimension_numbers = #tpu.dot_dimension_numbers<[1], [0], [0], [1], [0, 0, 1, 1], [], []>} : vector<32x128xbf16>, vector<128x256xbf16>, vector<32x256xf32> -> vector<32x256xf32>
    %c0_3 = arith.constant 0 : index
    %c0_4 = arith.constant 0 : index
    %4 = vector.load %arg3[%c0_3, %c0_4] : memref<1x256xf32, #tpu.memory_space<vmem>>, vector<1x256xf32>
    %5 = vector.broadcast %4 : vector<1x256xf32> to vector<32x256xf32>
    %6 = arith.addf %3, %5 : vector<32x256xf32>
    %7 = math.tanh %6 : vector<32x256xf32>
    %8 = arith.truncf %7 : vector<32x256xf32> to vector<32x256xbf16>
    %c0_5 = arith.constant 0 : index
    %c0_6 = arith.constant 0 : index
    %9 = vector.load %arg4[%c0_5, %c0_6] : memref<256x128xbf16, #tpu.memory_space<vmem>>, vector<256x128xbf16>
    %cst_7 = arith.constant dense<0.000000e+00> : vector<32x128xf32>
    %10 = tpu.matmul %8, %9, %cst_7 {dimension_numbers = #tpu.dot_dimension_numbers<[1], [0], [0], [1], [0, 0, 1, 1], [], []>} : vector<32x256xbf16>, vector<256x128xbf16>, vector<32x128xf32> -> vector<32x128xf32>
    %c0_8 = arith.constant 0 : index
    %c0_9 = arith.constant 0 : index
    %11 = vector.load %arg5[%c0_8, %c0_9] : memref<1x128xf32, #tpu.memory_space<vmem>>, vector<1x128xf32>
    %12 = vector.broadcast %11 : vector<1x128xf32> to vector<32x128xf32>
    %13 = arith.addf %10, %12 : vector<32x128xf32>
    %14 = arith.addf %13, %0 : vector<32x128xf32>
    %c0_10 = arith.constant 0 : index
    %c0_11 = arith.constant 0 : index
    %15 = vector.load %arg6[%c0_10, %c0_11] : memref<32x128xf32, #tpu.memory_space<vmem>>, vector<32x128xf32>
    tpu.vector_store %arg6[%c0_10, %c0_11], %14 {strides = array<i32>} : memref<32x128xf32, #tpu.memory_space<vmem>>, vector<32x128xf32>,
    return
  }
  func.func @transform_0(%arg0: i32) -> (i32, i32) {
    %c0_i32 = arith.constant 0 : i32
    %c0_i32_0 = arith.constant 0 : i32
    return %arg0, %c0_i32 : i32, i32
  }
  func.func @transform_1(%arg0: i32) -> (i32, i32) {
    %c0_i32 = arith.constant 0 : i32
    %c0_i32_0 = arith.constant 0 : i32
    %c0_i32_1 = arith.constant 0 : i32
    return %c0_i32, %c0_i32_0 : i32, i32
  }
  func.func @transform_2(%arg0: i32) -> (i32, i32) {
    %c0_i32 = arith.constant 0 : i32
    %c0_i32_0 = arith.constant 0 : i32
    %c0_i32_1 = arith.constant 0 : i32
    return %c0_i32, %c0_i32_0 : i32, i32
  }
  func.func @transform_3(%arg0: i32) -> (i32, i32) {
    %c0_i32 = arith.constant 0 : i32
    %c0_i32_0 = arith.constant 0 : i32
    %c0_i32_1 = arith.constant 0 : i32
    return %c0_i32, %c0_i32_0 : i32, i32
  }
  func.func @transform_4(%arg0: i32) -> (i32, i32) {
    %c0_i32 = arith.constant 0 : i32
    %c0_i32_0 = arith.constant 0 : i32
    %c0_i32_1 = arith.constant 0 : i32
    return %c0_i32, %c0_i32_0 : i32, i32
  }
  func.func @transform_5(%arg0: i32) -> (i32, i32) {
    %c0_i32 = arith.constant 0 : i32
    %c0_i32_0 = arith.constant 0 : i32
    return %arg0, %c0_i32 : i32, i32
  }
}

</mosaic_0001>

<bundles_post_ra>
// kernel: tpu_custom_call.1
= control target key start
LH: loop header
LB: loop body
LE: loop exit
PB: predicated region body
PF: predicated region fallthrough
CT: control target
= control target key end

     0   :  { %10 = vsyncpa [#allocation3], 0  ;;  %s1469_s0 = inlined_call_operand.hbm [shape: f32[50,128], index: 0, kind: input, shape index: {}]   ;;  %s1470_s1 = inlined_call_operand.hbm [shape: bf16[128,256], index: 1, kind: input, shape index: {}]   ;;  %s1471_s2 = inlined_call_operand.vmem [shape: f32[1,256], index: 2, kind: input, shape index: {}]   ;;  %s1472_s3 = inlined_call_operand.hbm [shape: bf16[256,128], index: 3, kind: input, shape index: {}]   ;;  %s1473_s4 = inlined_call_operand.vmem [shape: f32[1,128], index: 4, kind: input, shape index: {}]   ;;  %s1474_s5 = inlined_call_operand.hbm [shape: f32[50,128], index: 5, kind: output, shape index: {}]  }
   0x1   :  { %12 = vsyncpa [#allocation3 + $0x1], 0 }
   0x2   :  { %13 = vsyncpa [#allocation6], 0 }
   0x3   :  { %14 = vsyncpa [#allocation4], 0 }
   0x4   :  { %16 = vsyncpa [#allocation4 + $0x1], 0  ;;  %s1185_s18 = smov 0   ;;  %s1187_s19 = smov 0  }
   0x5   :  { %s1189_s20 = smov 0   ;;  %s1191_s21 = smov 0  }
   0x6 LB: > { %s1206_s22 = sadd.s32 4294967295, %s1140_s21   ;;  %s772_s23 = sadd.s32 4294967294, %s1140_s21   ;;  %s1140_s21 = sphi %s1191_s21, %s1496_s21   ;;  %s1136_s20 = sphi %s1189_s20, %s1495_s20   ;;  %s1132_s19 = sphi %s1187_s19, %s1494_s19   ;;  %s1128_s18 = sphi %s1185_s18, %s1493_s18  }
   0x7   : > { %s1210_s24 = sadd.s32 1, %s1140_s21   ;;  %s29_s25 = sadd.s32 1, %s1136_s20 }
   0x8   : > { %s26_s26 = ssub.s32 %s1140_s21, %s1210_s24  ;;  %p36_p0 = scmp.ne.s32.totalorder %s1136_s20, %s1132_s19 }
   0x9   : > { %p27_p1 = scmp.eq.s32.totalorder %s26_s26, 0  ;;  %p37_p2 = scmp.eq.s32.totalorder %s1140_s21, 0 }
   0xa   : > { %p42_p3 = scmp.ne.s32.totalorder %s1132_s19, %s1128_s18  ;;  %p1475_p4 = scmp.eq.s32.totalorder %s1206_s22, 0 }
   0xb   : > { %s1222_s27 = scalar_select %p27_p1, %s1136_s20, %s29_s25  }
   0xc   : > { %p1224_p5 = por %p37_p2, %p36_p0  ;;  %p1230_p6 = por %p1475_p4, %p42_p3 }
   0xd   : > { %1478 = sst [smem:[#allocation12_spill]] %s1222_s27  ;;  %p150_p7 = scmp.eq.s32.totalorder %s1206_s22, 1 }
   0xe   : > { %s1479_s28 = scalar_select %p1224_p5, 1, 0 }
   0xf   : > { %s1480_s29 = scalar_select %p1230_p6, 1, 0 }
  0x10   : > { %p156_p8 = scmp.eq.s32.totalorder %s772_s23, 1  ;;  %p773_p9 = scmp.ge.s32.totalorder %s1140_s21, 1 }
  0x11   : > { %p163_p10 = scmp.lt.s32.totalorder %s1140_s21, 3  ;;  %p1237_p11 = por %p150_p7, %p36_p0 }
  0x12   : > { %p1241_p12 = por %p156_p8, %p42_p3  ;;  %s1142_s8 = smov [#allocation5]  }
  0x13   : > { %s1481_s30 = scalar_select %p1237_p11, 1, 0 }
  0x14   : > { %s1482_s6 = scalar_select %p1241_p12, 1, 0 }
  0x15   : > { %p1245_p13 = pnand %p773_p9, %p163_p10  ;;  %s175_s9 = sshll.u32 %s1142_s8, 4  ;;  %s176_s9 = int_to_ptr.vmem [resolvable:$true] %s175_s9 }
  0x16   : > { %s1143_s11 = smov [#allocation7]   ;;  %s986_s15 = scalar_lea.hbm %s1470_s1, 2048 }
  0x17   : > { %s1483_s7 = scalar_select %p1245_p13, 1, 0 }
  0x18   : > { %p871_p1 = pneg %p1245_p13  ;;  %s191_s12 = sshll.u32 %s1143_s11, 4  ;;  %s1257_s12 = int_to_ptr.vmem [resolvable:$true] %s191_s12 }
  0x19   : > { %p987_p0 = scmp.ne.s32.totalorder %s1470_s1, %s986_s15  ;;  %p993_p9 = scmp.lt.u32.totalorder %s986_s15, %s1470_s1 }
  0x1a   : > { %p1253_p2 = pnand %p871_p1, %p1475_p4 }
  0x1c   : > { %p988_p3 = pneg %p1253_p2 }
  0x1e   : > { %p989_p7 = pnand %p988_p3, %p987_p0 }
  0x20   : > { %p990_p8 = pneg %p989_p7 }
  0x22   : > { %p995_p10 = pnand %p993_p9, %p990_p8 }
  0x24   : > { %998 = shalt.err (!%p995_p10)
}
  0x25   : > { %s999_s26 = scalar_lea.vmem %s176_s9, 2048  ;;  %p1007_p11 = scmp.lt.s32.totalorder %s176_s9, %s176_s9 }
  0x26   : > { %p1000_p1 = scmp.ne.s32.totalorder %s176_s9, %s999_s26  ;;  %p1008_p6 = scmp.lt.s32.totalorder %s999_s26, %s999_s26 }
  0x28   : > { %p1002_p4 = pnand %p1000_p1, %p988_p3  ;;  %p1009_p13 = por %p1008_p6, %p1007_p11 }
  0x2a   : > { %p1003_p12 = pneg %p1002_p4 }
  0x2c   : > { %p1010_p5 = pnand %p1009_p13, %p1003_p12 }
  0x2e   : > { %1013 = shalt.err (!%p1010_p5)
}
  0x2f   : > { %s1144_s8 = smov 128   ;;  %s1145_s11 = smov 8  }
  0x30   : > { %874 = dma.hbm_to_vmem [thread:$0]  (!%p1253_p2), %s1470_s1, 2048, %s176_s9, [#allocation6], %s1144_s8, %s1144_s8, %s1145_s11  }
  0x31   : > { %s1014_s17 = scalar_lea.hbm %s1472_s3, 2048 }
  0x32   : > { %p1015_p4 = scmp.ne.s32.totalorder %s1472_s3, %s1014_s17  ;;  %p1021_p11 = scmp.lt.u32.totalorder %s1014_s17, %s1472_s3 }
  0x34   : > { %p1017_p5 = pnand %p1015_p4, %p988_p3 }
  0x36   : > { %p1018_p6 = pneg %p1017_p5 }
  0x38   : > { %p1023_p12 = pnand %p1021_p11, %p1018_p6 }
  0x3a   : > { %1026 = shalt.err (!%p1023_p12)
}
  0x3b   : > { %s1027_s9 = scalar_lea.vmem %s1257_s12, 2048  ;;  %p1035_p8 = scmp.lt.s32.totalorder %s1257_s12, %s1257_s12 }
  0x3c   : > { %p1028_p13 = scmp.ne.s32.totalorder %s1257_s12, %s1027_s9  ;;  %p1036_p9 = scmp.lt.s32.totalorder %s1027_s9, %s1027_s9 }
  0x3e   : > { %p1030_p0 = pnand %p1028_p13, %p988_p3  ;;  %p1037_p10 = por %p1036_p9, %p1035_p8 }
  0x40   : > { %p1031_p7 = pneg %p1030_p0 }
  0x42   : > { %p1038_p1 = pnand %p1037_p10, %p1031_p7 }
  0x44   : > { %1041 = shalt.err (!%p1038_p1)
}
  0x45   : > { %s1146_s27 = smov 64   ;;  %s1147_s8 = smov 4  }
  0x46   : > { %877 = dma.hbm_to_vmem [thread:$0]  (!%p1253_p2), %s1472_s3, 2048, %s1257_s12, [#allocation6], %s1146_s27, %s1146_s27, %s1147_s8  }
  0x47   : > { %p776_p4 = scmp.ge.s32.totalorder %s1140_s21, 2 }
  0x48   : > { %p1485_p3 = scmp.ne.s32.totalorder (!%p776_p4), %s1479_s28, 0 }
  0x49   : > { %204 = sbr.rel (%p776_p4) target bundleno = 115 (0x73), region = 32 }
  0x50   : > { %207 = sbr.rel (!%p1485_p3) target bundleno = 115 (0x73), region = 36  ;;  %s208_s14 = sand.u32 (%p1485_p3), 1, %s1136_s20  }
  0x51   : > { %s778_s15 = sshll.u32 (%p1485_p3), %s1140_s21, 2  ;;  %s777_s16 = sshll.u32 (%p1485_p3), %s208_s14, 5 }
  0x52   : > { %s214_s17 = ssub.s32 (%p1485_p3), 7, %s778_s15  ;;  %s1316_s23 = scalar_lea.sflag (%p1485_p3), [#allocation3], %s208_s14 }
  0x53   : > { %p215_p5 = scmp.lt.s32.totalorder (%p1485_p3), %s214_s17, 4  ;;  %s212_s25 = scalar_lea.vmem (%p1485_p3), [#allocation2], %s777_s16 }
  0x57   : > { %s1498_s17 = smov (!%p215_p5, %s214_s17), 4 }
  0x58   : > { %s1313_s10 = sshll.u32 %s1498_s17, 7 }
  0x59   : > { %s219_s12 = ssub.s32 512, %s1313_s10 }
  0x5a   : > { %220 = vsyncadd %s1316_s23, %s219_s12  ;;  %p780_p2 = scmp.ne.s32.totalorder %s1313_s10, 0  ;;  %s831_s28 = sshll.u32 %s1140_s21, 9 }
  0x5b   : > { %s1324_s27 = scalar_lea.hbm %s1469_s0, %s831_s28  ;;  %s225_s8 = sshll.u32 %s212_s25, 4  ;;  %s1326_s8 = int_to_ptr.vmem [resolvable:$true] %s225_s8 }
  0x5c   : > { %s1042_s11 = scalar_lea.hbm %s1324_s27, %s1313_s10  ;;  %s1046_s15 = scalar_lea.hbm %s1469_s0, 896 }
  0x5d   : > { %p1043_p6 = scmp.ne.s32.totalorder %s1324_s27, %s1042_s11  ;;  %p1047_p13 = scmp.lt.u32.totalorder %s1324_s27, %s1469_s0 }
  0x5e   : > { %p1048_p0 = scmp.lt.u32.totalorder %s1046_s15, %s1042_s11  ;;  %p1050_p8 = scmp.lt.u32.totalorder %s1042_s11, %s1324_s27 }
  0x5f   : > { %p1044_p11 = pnand %p1043_p6, %p780_p2 }
  0x60   : > { %p1049_p7 = por %p1048_p0, %p1047_p13 }
  0x61   : > { %p1045_p12 = pneg %p1044_p11 }
  0x62   : > { %p1051_p9 = por %p1050_p8, %p1049_p7 }
  0x64   : > { %p1052_p10 = pnand %p1051_p9, %p1045_p12 }
  0x66   : > { %1055 = shalt.err (!%p1052_p10)
}
  0x67   : > { %s1056_s12 = scalar_lea.vmem %s1326_s8, %s1313_s10  ;;  %s1148_s25 = smov [#allocation2]  }
  0x68   : > { %p1057_p1 = scmp.ne.s32.totalorder %s1326_s8, %s1056_s12  ;;  %s1060_s28 = sshll.u32 %s1148_s25, 4  ;;  %s1061_s28 = int_to_ptr.vmem [resolvable:$false] %s1060_s28 }
  0x69   : > { %s1062_s26 = scalar_lea.vmem %s1061_s28, 1024  ;;  %p1063_p6 = scmp.lt.s32.totalorder %s1326_s8, %s1061_s28 }
  0x6a   : > { %p1058_p3 = pnand %p1057_p1, %p780_p2  ;;  %p1064_p11 = scmp.lt.s32.totalorder %s1062_s26, %s1056_s12 }
  0x6c   : > { %p1059_p5 = pneg %p1058_p3  ;;  %p1065_p13 = por %p1064_p11, %p1063_p6 }
  0x6e   : > { %p1066_p0 = pnand %p1065_p13, %p1059_p5 }
  0x70   : > { %1069 = shalt.err (!%p1066_p0)
}
  0x71   : > { %s1149_s9 = smov 128   ;;  %s1150_s11 = smov 8  }
  0x72   : > { %231 = dma.hbm_to_vmem [thread:$0]  (%p780_p2), %s1324_s27, %s1313_s10, %s1326_s8, %s1316_s23, %s1149_s9, %s1149_s9, %s1150_s11  }
  0x73 PF: > { %p1486_p12 = scmp.ne.s32.totalorder %s1483_s7, 0 }
  0x74   : > { %s1356_s13 = sand.u32 (!%p1486_p12), 1, %s1132_s19   ;;  %p1487_p7 = scmp.ne.s32.totalorder (!%p1486_p12), %s1480_s29, 0 }
  0x75   : > { %237 = sbr.rel (%p1486_p12) target bundleno = 650 (0x28a), region = 40  ;;  %s785_s14 = sshll.u32 (!%p1486_p12), %s1356_s13, 5 }
  0x76   : > { %s240_s15 = scalar_lea.sflag (!%p1486_p12), [#allocation3], %s1356_s13  ;;  %s1362_s16 = scalar_lea.vmem (!%p1486_p12), [#allocation2], %s785_s14 }
  0x7c   : > { %1115 = dma.done.wait (%p1487_p7), %s240_s15, 512  }
  0x7d   : > { %1117 = vsyncadd (%p1487_p7), %s240_s15, 4294966784  ;;  %p1488_p2 = scmp.eq.s32.totalorder %s1206_s22, 0 }
  0x7f   : > { %1119 = dma.done.wait (%p1488_p2), [#allocation6], 4096   ;;  %p1489_p8 = pmov %p1488_p2 }
  0x80   : > { %v1151_v0 = vmov 0   ;;  %v930_v1 = vld [vmem:[#allocation5 + $0x4] ss:$8 sps:$4 sm:$0xff]   ;;  %v932_v2 = vld [vmem:[#allocation5] ss:$8 sps:$4 sm:$0xff]   ;;  %v958_v16 = vld [vmem:[#allocation7 + $0x50] sm:$0xff]   ;;  %v313_v39 = vlaneseq }
  0x81   : > { %1121 = vsyncadd (%p1489_p8), [#allocation6], 4294963200  ;;  %435 = vmatprep.mubr.bf16.mxu0 %v1151_v0  ;;  %403 = vmatprep.subr.bf16.mxu0 %v930_v1  ;;  %v933_v3 = vld [vmem:[#allocation5 + $0x14] ss:$8 sps:$4 sm:$0xff]   ;;  %v935_v4 = vld [vmem:[#allocation5 + $0x10] ss:$8 sps:$4 sm:$0xff]  }
  0x82   : > { %404 = vmatpush1.bf16.msra.mxu0 %v932_v2  ;;  %v936_v5 = vld [vmem:[#allocation5 + $0x24] ss:$8 sps:$4 sm:$0xff]   ;;  %v938_v6 = vld [vmem:[#allocation5 + $0x20] ss:$8 sps:$4 sm:$0xff]   ;;  %v939_v7 = vld [vmem:[#allocation5 + $0x34] ss:$8 sps:$4 sm:$0xff]  }
  0x83   : > { %405 = vmatprep.subr.bf16.mxu0 %v933_v3  ;;  %v941_v8 = vld [vmem:[#allocation5 + $0x30] ss:$8 sps:$4 sm:$0xff]   ;;  %v942_v9 = vld [vmem:[#allocation5 + $0x44] ss:$8 sps:$4 sm:$0xff]   ;;  %v944_v11 = vld [vmem:[#allocation5 + $0x40] ss:$8 sps:$4 sm:$0xff]  }
  0x84   : > { %v954_v10 = vld [vmem:[#allocation7 + $0x40] sm:$0xff]   ;;  %v945_v13 = vld [vmem:[#allocation5 + $0x54] ss:$8 sps:$4 sm:$0xff]   ;;  %v956_v14 = vld [vmem:[#allocation7 + $0x48] sm:$0xff]   ;;  %v314_v40 = vshrl.u32 %v313_v39, 7  ;;  %s1397_s27 = scalar_lea.vmem [#allocation8], %s785_s14 }
  0x85   : > { %v955_v12 = vld [vmem:[#allocation7] sm:$0xff]   ;;  %833 = vmatprep.subr.bf16.mxu1 %v954_v10  ;;  %v957_v15 = vld [vmem:[#allocation7 + $0x8] sm:$0xff]   ;;  %v947_v17 = vld [vmem:[#allocation5 + $0x50] ss:$8 sps:$4 sm:$0xff]   ;;  %s661_s8 = scalar_lea.sflag [#allocation4], %s1356_s13  ;;  %p1490_p9 = scmp.ne.s32.totalorder %s1481_s30, 0 }
  0x86   : > { %406 = vmatpush1.bf16.msra.mxu0 %v935_v4  ;;  %834 = vmatpush3.bf16.msra.mxu1 %v955_v12  ;;  %v948_v18 = vld [vmem:[#allocation5 + $0x64] ss:$8 sps:$4 sm:$0xff]   ;;  %v959_v19 = vld [vmem:[#allocation7 + $0x10] sm:$0xff]   ;;  %v950_v20 = vld [vmem:[#allocation5 + $0x60] ss:$8 sps:$4 sm:$0xff]   ;;  %v315_v41 = vsub.s32 0, %v314_v40 }
  0x87   : > { %407 = vmatprep.subr.bf16.mxu0 %v936_v5  ;;  %835 = vmatprep.subr.bf16.mxu1 %v956_v14  ;;  %v951_v21 = vld [vmem:[#allocation5 + $0x74] ss:$8 sps:$4 sm:$0xff]   ;;  %v953_v22 = vld [vmem:[#allocation5 + $0x70] ss:$8 sps:$4 sm:$0xff]   ;;  %v1373_v23 = vld [vmem:[%s1362_s16] sm:$0xff]  ;;  %v319_v43 = vsub.s32 1, %v314_v40 }
  0x88   : > { %v1376_v24 = vld [vmem:[%s1362_s16 + $0x8] sm:$0xff]  ;;  %v1381_v26 = vld [vmem:[%s1362_s16 + $0x10] sm:$0xff]  ;;  %v1384_v27 = vld [vmem:[%s1362_s16 + $0x18] sm:$0xff]  ;;  %s823_s17 = sshll.u32 (%p1490_p9), %s1206_s22, 2 }
  0x89   : > { %v293_v25 = vpack.c.bf16 %v1376_v24, %v1373_v23  ;;  %v294_v28 = vpack.c.bf16 %v1384_v27, %v1381_v26  ;;  %v960_v29 = vld [vmem:[#allocation7 + $0x58] sm:$0xff]   ;;  %v962_v31 = vld [vmem:[#allocation7 + $0x60] sm:$0xff]   ;;  %v964_v33 = vld [vmem:[#allocation7 + $0x68] sm:$0xff]   ;;  %s669_s12 = ssub.s32 (%p1490_p9), 7, %s823_s17 }
  0x8a   : > { %408 = vmatpush1.bf16.msra.mxu0 %v938_v6  ;;  %836 = vmatpush3.bf16.msra.mxu1 %v957_v15  ;;  %v961_v30 = vld [vmem:[#allocation7 + $0x18] sm:$0xff]   ;;  %v963_v32 = vld [vmem:[#allocation7 + $0x20] sm:$0xff]   ;;  %v965_v34 = vld [vmem:[#allocation7 + $0x28] sm:$0xff]   ;;  %p670_p10 = scmp.lt.s32.totalorder (%p1490_p9), %s669_s12, 4 }
  0x8b   : > { %409 = vmatprep.subr.bf16.mxu0 %v939_v7  ;;  %837 = vmatprep.subr.bf16.mxu1 %v958_v16  ;;  %v966_v35 = vld [vmem:[#allocation7 + $0x70] sm:$0xff]   ;;  %v968_v37 = vld [vmem:[#allocation7 + $0x78] sm:$0xff]   ;;  %v311_v42 = vld [vmem:[%s1471_s2] sm:$0x3] }
  0x8c   : > { %v967_v36 = vld [vmem:[#allocation7 + $0x30] sm:$0xff]   ;;  %v969_v38 = vld [vmem:[#allocation7 + $0x38] sm:$0xff]   ;;  %v316_v44 = vrot.slane %v311_v42, %v315_v41  ;;  %v320_v45 = vrot.slane %v311_v42, %v319_v43 }
  0x8e   : > { %410 = vmatpush1.bf16.msra.mxu0 %v941_v8  ;;  %838 = vmatpush3.bf16.msra.mxu1 %v959_v19 }
  0x8f   : > { %411 = vmatprep.subr.bf16.mxu0 %v942_v9  ;;  %839 = vmatprep.subr.bf16.mxu1 %v960_v29 }
  0x92   : > { %412 = vmatpush1.bf16.msra.mxu0 %v944_v11  ;;  %840 = vmatpush3.bf16.msra.mxu1 %v961_v30  ;;  %v805_v11 = vld [vmem:[%s1473_s4] ss:$0 sm:$0xff] }
  0x93   : > { %413 = vmatprep.subr.bf16.mxu0 %v945_v13  ;;  %841 = vmatprep.subr.bf16.mxu1 %v962_v31 }
  0x96   : > { %414 = vmatpush1.bf16.msra.mxu0 %v947_v17  ;;  %842 = vmatpush3.bf16.msra.mxu1 %v963_v32 }
  0x97   : > { %415 = vmatprep.subr.bf16.mxu0 %v948_v18  ;;  %843 = vmatprep.subr.bf16.mxu1 %v964_v33 }
  0x9a   : > { %416 = vmatpush1.bf16.msra.mxu0 %v950_v20  ;;  %844 = vmatpush3.bf16.msra.mxu1 %v965_v34 }
  0x9b   : > { %417 = vmatprep.subr.bf16.mxu0 %v951_v21  ;;  %845 = vmatprep.subr.bf16.mxu1 %v966_v35 }
  0x9e   : > { %418 = vmatpush1.bf16.msra.mxu0 %v953_v22  ;;  %846 = vmatpush3.bf16.msra.mxu1 %v967_v36 }
  0x9f   : > { %847 = vmatprep.subr.bf16.mxu1 %v968_v37 }
  0xa1   : > { %436 = vmatmul.mubr.bf16.vlgmr.msra.gmra.mrb[0].mxu0 %v293_v25 }
  0xa2   : > { %445 = vmatprep.mubr.bf16.mxu0 %v1151_v0  ;;  %848 = vmatpush3.bf16.msra.mxu1 %v969_v38 }
  0xa9   : > { %446 = vmatmul.mubr.bf16.gmra.mrb[4].mxu0 %v294_v28 }
 0x174   : > { %v437_v46 = vpop.f32.mrb[0].mxu0 }
 0x175   : > { %v438_v47 = vadd.f32 %v437_v46, %v316_v44  ;;  %v439_v48 = vpop.f32.mrb[1].mxu0 }
 0x176   : > { %v440_v49 = vadd.f32 %v439_v48, %v320_v45  ;;  %v441_v50 = vpop.f32.mrb[2].mxu0 }
 0x177   : > { %970 = vtanh.f32 %v438_v47  ;;  %v442_v51 = vadd.f32 %v441_v50, %v316_v44  ;;  %v443_v52 = vpop.f32.mrb[3].mxu0 }
 0x178   : > { %972 = vtanh.f32 %v440_v49  ;;  %v444_v53 = vadd.f32 %v443_v52, %v320_v45 }
 0x179   : > { %974 = vtanh.f32 %v442_v51 }
 0x17a   : > { %976 = vtanh.f32 %v444_v53 }
 0x17c   : > { %v447_v54 = vpop.f32.mrb[4].mxu0 }
 0x17d   : > { %v448_v55 = vadd.f32 %v447_v54, %v316_v44  ;;  %v449_v56 = vpop.f32.mrb[5].mxu0 }
 0x17e   : > { %v450_v57 = vadd.f32 %v449_v56, %v320_v45  ;;  %v451_v58 = vpop.f32.mrb[6].mxu0 }
 0x17f   : > { %978 = vtanh.f32 %v448_v55  ;;  %v452_v59 = vadd.f32 %v451_v58, %v316_v44  ;;  %v453_v60 = vpop.f32.mrb[7].mxu0 }
 0x180   : > { %980 = vtanh.f32 %v450_v57  ;;  %v454_v61 = vadd.f32 %v453_v60, %v320_v45 }
 0x181   : > { %v971_v62 = vpop.eup %970  ;;  %982 = vtanh.f32 %v452_v59 }
 0x182   : > { %v973_v63 = vpop.eup %972  ;;  %984 = vtanh.f32 %v454_v61 }
 0x183   : > { %v975_v0 = vpop.eup %974 }
 0x184   : > { %v977_v1 = vpop.eup %976  ;;  %v464_v2 = vpack.c.bf16 %v975_v0, %v971_v62 }
 0x185   : > { %v465_v3 = vpack.c.bf16 %v977_v1, %v973_v63 }
 0x187   : > { %635 = vmatprep.mubr.bf16.mxu1 %v465_v3 }
 0x188   : > { %636 = vmatmul.mubr.bf16.vlgmr.msra.gmra.mrb[0].mxu1 %v464_v2 }
 0x189   : > { %v979_v4 = vpop.eup %978 }
 0x18a   : > { %v981_v5 = vpop.eup %980 }
 0x18b   : > { %v983_v6 = vpop.eup %982 }
 0x18c   : > { %v985_v7 = vpop.eup %984  ;;  %v466_v8 = vpack.c.bf16 %v983_v6, %v979_v4 }
 0x18d   : > { %v467_v9 = vpack.c.bf16 %v985_v7, %v981_v5 }
 0x18f   : > { %643 = vmatprep.mubr.bf16.mxu1 %v467_v9 }
 0x190   : > { %644 = vmatmul.mubr.bf16.gmra.mrb[4].mxu1 %v466_v8 }
 0x25b   : > { %v849_v10 = vpop.f32.mrb[0].mxu1 }
 0x25c   : > { %v850_v12 = vpop.f32.mrb[1].mxu1 }
 0x25d   : > { %v851_v13 = vadd.f32 %v850_v12, %v849_v10  ;;  %v852_v14 = vpop.f32.mrb[2].mxu1 }
 0x25e   : > { %v853_v15 = vpop.f32.mrb[3].mxu1 }
 0x25f   : > { %v638_v16 = vadd.f32 %v851_v13, %v805_v11  ;;  %v854_v17 = vadd.f32 %v853_v15, %v852_v14 }
 0x261   : > { %v652_v18 = vadd.f32 %v638_v16, %v1373_v23  ;;  %v641_v19 = vadd.f32 %v854_v17, %v805_v11 }
 0x263   : > { %656 = vst [vmem:[%s1397_s27] sm:$0xff] %v652_v18  ;;  %v653_v20 = vadd.f32 %v641_v19, %v1376_v24  ;;  %v855_v21 = vpop.f32.mrb[4].mxu1 }
 0x264   : > { %v856_v22 = vpop.f32.mrb[5].mxu1 }
 0x265   : > { %657 = vst [vmem:[%s1397_s27 + $0x8] sm:$0xff] %v653_v20  ;;  %v857_v25 = vadd.f32 %v856_v22, %v855_v21  ;;  %v858_v28 = vpop.f32.mrb[6].mxu1 }
 0x266   : > { %v859_v29 = vpop.f32.mrb[7].mxu1 }
 0x267   : > { %v646_v30 = vadd.f32 %v857_v25, %v805_v11  ;;  %v860_v23 = vadd.f32 %v859_v29, %v858_v28  ;;  %667 = sbr.rel (!%p1490_p9) target bundleno = 650 (0x28a), region = 56 }
 0x269   : > { %v654_v31 = vadd.f32 %v646_v30, %v1381_v26  ;;  %v649_v32 = vadd.f32 %v860_v23, %v805_v11 }
 0x26b   : > { %658 = vst [vmem:[%s1397_s27 + $0x10] sm:$0xff] %v654_v31  ;;  %v655_v33 = vadd.f32 %v649_v32, %v1384_v27 }
 0x26d   : > { %659 = vst [vmem:[%s1397_s27 + $0x18] sm:$0xff] %v655_v33 }
 0x26e   : > { %s1500_s12 = smov (!%p670_p10, %s669_s12), 4 }
 0x26f   : > { %s1410_s25 = sshll.u32 %s1500_s12, 7 }
 0x270   : > { %s674_s28 = ssub.s32 512, %s1410_s25 }
 0x271   : > { %675 = vsyncadd %s661_s8, %s674_s28  ;;  %p825_p1 = scmp.ne.s32.totalorder %s1410_s25, 0  ;;  %s832_s30 = sshll.u32 %s1206_s22, 9 }
 0x272   : > { %s1420_s11 = scalar_lea.hbm %s1474_s5, %s832_s30  ;;  %s680_s14 = sshll.u32 %s1397_s27, 4  ;;  %s1423_s14 = int_to_ptr.vmem [resolvable:$true] %s680_s14 }
 0x273   : > { %s1070_s15 = scalar_lea.vmem %s1423_s14, %s1410_s25  ;;  %s1152_s16 = smov [#allocation8]  }
 0x274   : > { %p1071_p3 = scmp.ne.s32.totalorder %s1423_s14, %s1070_s15  ;;  %s1074_s29 = sshll.u32 %s1152_s16, 4  ;;  %s1075_s29 = int_to_ptr.vmem [resolvable:$false] %s1074_s29 }
 0x275   : > { %s1076_s22 = scalar_lea.vmem %s1075_s29, 1024  ;;  %p1077_p11 = scmp.lt.s32.totalorder %s1423_s14, %s1075_s29 }
 0x276   : > { %p1072_p5 = pnand %p1071_p3, %p825_p1  ;;  %p1078_p13 = scmp.lt.s32.totalorder %s1076_s22, %s1070_s15 }
 0x278   : > { %p1073_p6 = pneg %p1072_p5  ;;  %p1079_p0 = por %p1078_p13, %p1077_p11 }
 0x27a   : > { %p1080_p12 = pnand %p1079_p0, %p1073_p6 }
 0x27c   : > { %1083 = shalt.err (!%p1080_p12)
}
 0x27d   : > { %s1084_s7 = scalar_lea.hbm %s1420_s11, %s1410_s25  ;;  %s1088_s27 = scalar_lea.hbm %s1474_s5, 896 }
 0x27e   : > { %p1085_p7 = scmp.ne.s32.totalorder %s1420_s11, %s1084_s7  ;;  %p1089_p9 = scmp.lt.u32.totalorder %s1420_s11, %s1474_s5 }
 0x27f   : > { %p1090_p10 = scmp.lt.u32.totalorder %s1088_s27, %s1084_s7  ;;  %p1092_p5 = scmp.lt.u32.totalorder %s1084_s7, %s1420_s11 }
 0x280   : > { %p1086_p2 = pnand %p1085_p7, %p825_p1 }
 0x281   : > { %p1091_p3 = por %p1090_p10, %p1089_p9 }
 0x282   : > { %p1087_p8 = pneg %p1086_p2 }
 0x283   : > { %p1093_p6 = por %p1092_p5, %p1091_p3 }
 0x285   : > { %p1094_p11 = pnand %p1093_p6, %p1087_p8 }
 0x287   : > { %1097 = shalt.err (!%p1094_p11)
}
 0x288   : > { %s1153_s28 = smov 128   ;;  %s1154_s30 = smov 8  }
 0x289   : > { %686 = dma.vmem_to_hbm [thread:$0]  (%p825_p1), %s1423_s14, %s1410_s25, %s1420_s11, %s661_s8, %s1153_s28, %s1153_s28, %s1154_s30  }
 0x28a PF: > { %s695_s26 = sand.u32 1, %s1128_s18   ;;  %p1491_p13 = scmp.ne.s32.totalorder %s1482_s6, 0 }
 0x28b   : > { %s696_s9 = scalar_lea.sflag [#allocation4], %s695_s26 }
 0x28c   : > { %p879_p0 = pnand %p776_p4, %p1491_p13 }
 0x28e   : > { %1123 = dma.done.wait (!%p879_p0), %s696_s9, 512  }
 0x28f   : > { %1125 = vsyncadd (!%p879_p0), %s696_s9, 4294966784  ;;  %s1492_s15 = sld [smem:[#allocation12_spill]]  ;;  %p19_p12 = scmp.ge.s32.totalorder %s1210_s24, 4  }
 0x290   : > { %s1493_s18 = smov %s1132_s19  ;;  %s1494_s19 = smov %s1136_s20 }
 0x291   : > { %s1496_s21 = smov %s1210_s24  ;;  %21 = sbr.rel (!%p19_p12) target bundleno = 6 (0x6), region = 93 }
 0x295   : > { %s1495_s20 = smov %s1492_s15 }
 0x298   :  { %701 = vsyncpa [#allocation3], 1 }
 0x299   :  { %703 = vsyncpa [#allocation3 + $0x1], 1 }
 0x29a   :  { %704 = vsyncpa [#allocation6], 1 }
 0x29b   :  { %705 = vsyncpa [#allocation4], 1 }
 0x29c   :  { %707 = vsyncpa [#allocation4 + $0x1], 1 }

</bundles_post_ra>
